<compile_context>
chip_gen: v7x
topology: tpu7x:2x2x1
jax: 0.10.0
libtpu: 0.0.40
codegen_flags: <defaults>
</compile_context>

<pallas_src>
import functools

import jax
import jax.numpy as jnp
from jax.experimental import pallas as pl
from jax.experimental.pallas import tpu as pltpu


def _round_up(x, m):
    return ((x + m - 1) // m) * m


def _recip(x):
    """Fast reciprocal: EUP approximation + one Newton-Raphson refinement."""
    r = pl.reciprocal(x, approx=True)
    return r * (2.0 - x * r)


def _derive_block_rows(B, C, itemsize, budget_bytes=20 * 1024 * 1024):
    """Largest row tile whose double-buffered input + f32 temps fit the budget."""
    lane_c = _round_up(C, 128)          # the [rows, C] input block is lane-padded
    sub_c = _round_up(C, 8)
    bytes_per_row = (2 * lane_c * itemsize   # double-buffered prediction block
                     + 2 * 8 * 4             # double-buffered target block
                     + 10 * sub_c * 4        # live [C, rows] f32 intermediates
                     + 2 * 8 * 4)            # lane-wide output accumulators
    rows = int(budget_bytes // bytes_per_row)
    rows = max(128, min(rows, 32768))
    return (rows // 128) * 128


def dice_loss_kernel(pred_ref, tgt_ref, osum_ref, onval_ref, *,
                     smooth, ignore_index, batch_size, tiles_per_split):
    j = pl.program_id(1)

    @pl.when(j == 0)
    def _init():
        osum_ref[...] = jnp.zeros_like(osum_ref)
        onval_ref[...] = jnp.zeros_like(onval_ref)

    x = pred_ref[...]                                   # [TB, C] native dtype
    tgt = tgt_ref[...]                                  # [1, TB] int32
    TB, C = x.shape

    # Relayout [TB, C] -> [C, TB] (class on sublanes, batch on lanes) with an
    # identity matmul on the otherwise-idle MXU (same minor x minor contraction
    # pattern as q @ k^T).  Exact, and the VPU only ever sees the dense layout.
    ci = jax.lax.broadcasted_iota(jnp.int32, (C, C), 0)
    cj = jax.lax.broadcasted_iota(jnp.int32, (C, C), 1)
    eye = (ci == cj).astype(x.dtype)
    p = jax.lax.dot_general(eye, x, (((1,), (1,)), ((), ())),
                            preferred_element_type=jnp.float32)   # [C, TB] f32

    # softmax over the class (sublane) axis, all math in f32
    m = jnp.max(p, axis=0, keepdims=True)               # [1, TB]
    e = jnp.exp(p - m)
    sm = e * _recip(jnp.sum(e, axis=0, keepdims=True))  # [C, TB]

    cls = jax.lax.broadcasted_iota(jnp.int32, (C, TB), 0)
    onehot = (cls == tgt).astype(jnp.float32)           # [C, TB]

    num = 2.0 * sm * onehot + smooth
    den = sm * sm + onehot + smooth                     # onehot**2 == onehot
    per = 1.0 - num * _recip(den)                       # [C, TB]

    # sum over all classes, subtract the class-0 row (aligned static slice)
    col = jnp.sum(per, axis=0, keepdims=True) - per[0:1, :]     # [1, TB]

    # mask ignored rows and out-of-range lanes (ragged / duplicated last tile)
    tile = pl.program_id(0) * tiles_per_split + j
    lane = jax.lax.broadcasted_iota(jnp.int32, (1, TB), 1)
    in_range = (tile * TB + lane) < batch_size
    valid = jnp.logical_and(tgt != ignore_index, in_range)       # [1, TB]

    # per-lane partials only; the cross-lane reduction happens outside
    osum_ref[...] += jnp.where(valid, col, 0.0)
    onval_ref[...] += valid.astype(jnp.float32)


def dice_loss(prediction, target, smooth=1.0, ignore_index=-100,
              block_rows=None, core_splits=2):
    """prediction: [B, C] float (f32 or bf16), target: [B] int. Scalar f32 loss."""
    B, C = prediction.shape
    if C < 2:
        raise ValueError("DiceLoss drops class 0; need class_num >= 2.")

    tgt2d = target.reshape(1, B).astype(jnp.int32)      # tiny; metadata reshape

    itemsize = jnp.dtype(prediction.dtype).itemsize
    if block_rows is None:
        block_rows = _derive_block_rows(B, C, itemsize)
    block_rows = max(128, min(int(block_rows), _round_up(B, 128)))
    block_rows = _round_up(block_rows, 128)

    n_tiles = pl.cdiv(B, block_rows)
    core_splits = max(1, min(int(core_splits), n_tiles))
    tiles_per_split = pl.cdiv(n_tiles, core_splits)

    def pred_idx(i, j):
        return (jnp.minimum(i * tiles_per_split + j, n_tiles - 1), 0)

    def tgt_idx(i, j):
        return (0, jnp.minimum(i * tiles_per_split + j, n_tiles - 1))

    def out_idx(i, j):
        return (0, i)   # one resident accumulator block per core split

    kern = functools.partial(
        dice_loss_kernel,
        smooth=float(smooth),
        ignore_index=int(ignore_index),
        batch_size=B,
        tiles_per_split=tiles_per_split,
    )

    osum, onval = pl.pallas_call(
        kern,
        out_shape=(
            jax.ShapeDtypeStruct((1, core_splits * block_rows), jnp.float32),
            jax.ShapeDtypeStruct((1, core_splits * block_rows), jnp.float32),
        ),
        grid_spec=pltpu.PrefetchScalarGridSpec(
            num_scalar_prefetch=0,
            grid=(core_splits, tiles_per_split),
            in_specs=[
                pl.BlockSpec((block_rows, C), pred_idx),
                pl.BlockSpec((1, block_rows), tgt_idx),
            ],
            out_specs=(
                pl.BlockSpec((1, block_rows), out_idx),
                pl.BlockSpec((1, block_rows), out_idx),
            ),
        ),
        compiler_params=pltpu.CompilerParams(
            dimension_semantics=("parallel", "arbitrary"),
            vmem_limit_bytes=32 * 1024 * 1024,
        ),
    )(prediction, tgt2d)

    total = jnp.sum(osum)
    n_valid = jnp.maximum(jnp.sum(onval), 1.0)   # guard all-ignored batch
    return total / (n_valid * jnp.float32(C - 1))


def dice_loss_ref(prediction, target, smooth=1.0, ignore_index=-100):
    """Pure-JAX reference mirroring the PyTorch forward (mask instead of filter)."""
    p = jax.nn.softmax(prediction.astype(jnp.float32), axis=1)
    B, C = p.shape
    valid = (target != ignore_index).astype(jnp.float32)[:, None]
    onehot = jax.nn.one_hot(jnp.clip(target, 0, C - 1), C, dtype=jnp.float32)
    onehot = onehot * valid
    num = 2.0 * p * onehot + smooth
    den = p * p + onehot * onehot + smooth
    per = (1.0 - num / den) * valid
    per_class = jnp.sum(per, axis=0) / jnp.maximum(jnp.sum(valid), 1.0)
    return jnp.mean(per_class[1:])


if __name__ == "__main__":
    key = jax.random.PRNGKey(0)
    kp, kt, km = jax.random.split(key, 3)

    B, C = 300, 8  # batch, class_num (B deliberately not a multiple of 128)
    prediction = jax.random.normal(kp, (B, C), dtype=jnp.float32)
    target = jax.random.randint(kt, (B,), 0, C, dtype=jnp.int32)
    ignore_mask = jax.random.bernoulli(km, 0.25, (B,))
    target = jnp.where(ignore_mask, jnp.int32(-100), target)

    # multi-tile path: 3 row tiles of 128, ragged tail + a duplicated (fully
    # masked) tile on the 2-way core split
    loss = jax.block_until_ready(
        dice_loss(prediction, target, smooth=1.0, ignore_index=-100,
                  block_rows=128))
    ref = dice_loss_ref(prediction, target, smooth=1.0, ignore_index=-100)
    assert jnp.allclose(loss, ref, atol=1e-5, rtol=1e-5), (loss, ref)

    # single-tile path, bf16 storage (f32 math in-kernel), default block size
    pred_bf16 = prediction.astype(jnp.bfloat16)
    loss_bf16 = jax.block_until_ready(
        dice_loss(pred_bf16, target, smooth=1.0, ignore_index=-100))
    ref_bf16 = dice_loss_ref(pred_bf16, target, smooth=1.0, ignore_index=-100)
    assert jnp.allclose(loss_bf16, ref_bf16, atol=1e-4, rtol=1e-4), (loss_bf16, ref_bf16)

    print("KERNEL_OK")
</pallas_src>

<mosaic_0001>
module attributes {stable_mosaic.version = 11 : i64} {
  func.func @dice_loss_kernel(%arg0: i32, %arg1: i32, %arg2: memref<128x8xf32, #tpu.memory_space<vmem>>, %arg3: memref<1x128xi32, #tpu.memory_space<vmem>>, %arg4: memref<1x128xf32, #tpu.memory_space<vmem>>, %arg5: memref<1x128xf32, #tpu.memory_space<vmem>>) attributes {dimension_semantics = [#tpu.dimension_semantics<parallel>, #tpu.dimension_semantics<arbitrary>], iteration_bounds = array<i64: 2, 2>, scalar_prefetch = 0 : i64, scratch_operands = 0 : i64, tpu.core_type = #tpu.core_type<tc>, window_params = [{transform_indices = @transform_0, window_bounds = array<i64: 128, 8>}, {transform_indices = @transform_1, window_bounds = array<i64: 1, 128>}, {transform_indices = @transform_2, window_bounds = array<i64: 1, 128>}, {transform_indices = @transform_3, window_bounds = array<i64: 1, 128>}]} {
    %c0_i32 = arith.constant 0 : i32
    %0 = arith.cmpi eq, %arg1, %c0_i32 : i32
    %1 = arith.extui %0 : i1 to i32
    %c0_i32_0 = arith.constant 0 : i32
    %2 = arith.cmpi ne, %1, %c0_i32_0 : i32
    scf.if %2 {
      %cst_22 = arith.constant 0.000000e+00 : f32
      %72 = vector.broadcast %cst_22 : f32 to vector<1x128xf32>
      %c0_23 = arith.constant 0 : index
      %c0_24 = arith.constant 0 : index
      %73 = vector.load %arg4[%c0_23, %c0_24] : memref<1x128xf32, #tpu.memory_space<vmem>>, vector<1x128xf32>
      tpu.vector_store %arg4[%c0_23, %c0_24], %72 {strides = array<i32>} : memref<1x128xf32, #tpu.memory_space<vmem>>, vector<1x128xf32>,
      %cst_25 = arith.constant 0.000000e+00 : f32
      %74 = vector.broadcast %cst_25 : f32 to vector<1x128xf32>
      %c0_26 = arith.constant 0 : index
      %c0_27 = arith.constant 0 : index
      %75 = vector.load %arg5[%c0_26, %c0_27] : memref<1x128xf32, #tpu.memory_space<vmem>>, vector<1x128xf32>
      tpu.vector_store %arg5[%c0_26, %c0_27], %74 {strides = array<i32>} : memref<1x128xf32, #tpu.memory_space<vmem>>, vector<1x128xf32>,
    } else {
    }
    %c0 = arith.constant 0 : index
    %c0_1 = arith.constant 0 : index
    %3 = vector.load %arg2[%c0, %c0_1] : memref<128x8xf32, #tpu.memory_space<vmem>>, vector<128x8xf32>
    %c0_2 = arith.constant 0 : index
    %c0_3 = arith.constant 0 : index
    %4 = vector.load %arg3[%c0_2, %c0_3] : memref<1x128xi32, #tpu.memory_space<vmem>>, vector<1x128xi32>
    %5 = tpu.iota {dimensions = array<i32: 0>} : vector<8x8xi32>
    %6 = tpu.iota {dimensions = array<i32: 1>} : vector<8x8xi32>
    %7 = arith.cmpi eq, %5, %6 : vector<8x8xi32>
    %8 = arith.extui %7 : vector<8x8xi1> to vector<8x8xi32>
    %9 = arith.sitofp %8 : vector<8x8xi32> to vector<8x8xf32>
    %cst = arith.constant dense<0.000000e+00> : vector<8x128xf32>
    %10 = tpu.matmul %9, %3, %cst {dimension_numbers = #tpu.dot_dimension_numbers<[1], [1], [0], [0], [0, 0, 1, 0], [], []>} : vector<8x8xf32>, vector<128x8xf32>, vector<8x128xf32> -> vector<8x128xf32>
    %cst_4 = arith.constant dense<0xFF800000> : vector<128xf32>
    %11 = vector.multi_reduction <maximumf>, %10, %cst_4 [0] : vector<8x128xf32> to vector<128xf32>
    %12 = vector.shape_cast %11 : vector<128xf32> to vector<1x128xf32>
    %13 = vector.broadcast %12 : vector<1x128xf32> to vector<8x128xf32>
    %14 = arith.subf %10, %13 : vector<8x128xf32>
    %15 = math.exp %14 : vector<8x128xf32>
    %cst_5 = arith.constant dense<0.000000e+00> : vector<128xf32>
    %16 = vector.multi_reduction <add>, %15, %cst_5 [0] : vector<8x128xf32> to vector<128xf32>
    %17 = vector.shape_cast %16 : vector<128xf32> to vector<1x128xf32>
    %18 = tpu.reciprocal %17 {approx = true} : vector<1x128xf32> -> vector<1x128xf32>
    %19 = arith.mulf %17, %18 : vector<1x128xf32>
    %cst_6 = arith.constant 2.000000e+00 : f32
    %20 = vector.broadcast %cst_6 : f32 to vector<1x128xf32>
    %21 = arith.subf %20, %19 : vector<1x128xf32>
    %22 = arith.mulf %18, %21 : vector<1x128xf32>
    %23 = vector.broadcast %22 : vector<1x128xf32> to vector<8x128xf32>
    %24 = arith.mulf %15, %23 : vector<8x128xf32>
    %25 = tpu.iota {dimensions = array<i32: 0>} : vector<8x128xi32>
    %26 = vector.broadcast %4 : vector<1x128xi32> to vector<8x128xi32>
    %27 = arith.cmpi eq, %25, %26 : vector<8x128xi32>
    %28 = arith.extui %27 : vector<8x128xi1> to vector<8x128xi32>
    %29 = arith.sitofp %28 : vector<8x128xi32> to vector<8x128xf32>
    %cst_7 = arith.constant 2.000000e+00 : f32
    %30 = vector.broadcast %cst_7 : f32 to vector<8x128xf32>
    %31 = arith.mulf %30, %24 : vector<8x128xf32>
    %32 = arith.mulf %31, %29 : vector<8x128xf32>
    %cst_8 = arith.constant 1.000000e+00 : f32
    %33 = vector.broadcast %cst_8 : f32 to vector<8x128xf32>
    %34 = arith.addf %32, %33 : vector<8x128xf32>
    %35 = arith.mulf %24, %24 : vector<8x128xf32>
    %36 = arith.addf %35, %29 : vector<8x128xf32>
    %cst_9 = arith.constant 1.000000e+00 : f32
    %37 = vector.broadcast %cst_9 : f32 to vector<8x128xf32>
    %38 = arith.addf %36, %37 : vector<8x128xf32>
    %39 = tpu.reciprocal %38 {approx = true} : vector<8x128xf32> -> vector<8x128xf32>
    %40 = arith.mulf %38, %39 : vector<8x128xf32>
    %cst_10 = arith.constant 2.000000e+00 : f32
    %41 = vector.broadcast %cst_10 : f32 to vector<8x128xf32>
    %42 = arith.subf %41, %40 : vector<8x128xf32>
    %43 = arith.mulf %39, %42 : vector<8x128xf32>
    %44 = arith.mulf %34, %43 : vector<8x128xf32>
    %cst_11 = arith.constant 1.000000e+00 : f32
    %45 = vector.broadcast %cst_11 : f32 to vector<8x128xf32>
    %46 = arith.subf %45, %44 : vector<8x128xf32>
    %cst_12 = arith.constant dense<0.000000e+00> : vector<128xf32>
    %47 = vector.multi_reduction <add>, %46, %cst_12 [0] : vector<8x128xf32> to vector<128xf32>
    %48 = vector.shape_cast %47 : vector<128xf32> to vector<1x128xf32>
    %49 = vector.extract_strided_slice %46 {offsets = [0, 0], sizes = [1, 128], strides = [1, 1]} : vector<8x128xf32> to vector<1x128xf32>
    %50 = arith.subf %48, %49 : vector<1x128xf32>
    %c2_i32 = arith.constant 2 : i32
    %51 = arith.muli %arg0, %c2_i32 : i32
    %52 = arith.addi %51, %arg1 : i32
    %53 = tpu.iota {dimensions = array<i32: 1>} : vector<1x128xi32>
    %c128_i32 = arith.constant 128 : i32
    %54 = arith.muli %52, %c128_i32 : i32
    %55 = vector.broadcast %54 : i32 to vector<1x128xi32>
    %56 = arith.addi %55, %53 : vector<1x128xi32>
    %c300_i32 = arith.constant 300 : i32
    %57 = vector.broadcast %c300_i32 : i32 to vector<1x128xi32>
    %58 = arith.cmpi slt, %56, %57 : vector<1x128xi32>
    %c-100_i32 = arith.constant -100 : i32
    %59 = vector.broadcast %c-100_i32 : i32 to vector<1x128xi32>
    %60 = arith.cmpi ne, %4, %59 : vector<1x128xi32>
    %61 = arith.andi %60, %58 : vector<1x128xi1>
    %c0_13 = arith.constant 0 : index
    %c0_14 = arith.constant 0 : index
    %62 = vector.load %arg4[%c0_13, %c0_14] : memref<1x128xf32, #tpu.memory_space<vmem>>, vector<1x128xf32>
    %cst_15 = arith.constant 0.000000e+00 : f32
    %63 = vector.broadcast %cst_15 : f32 to vector<1x128xf32>
    %64 = arith.select %61, %50, %63 : vector<1x128xi1>, vector<1x128xf32>
    %65 = arith.addf %62, %64 : vector<1x128xf32>
    %c0_16 = arith.constant 0 : index
    %c0_17 = arith.constant 0 : index
    %66 = vector.load %arg4[%c0_16, %c0_17] : memref<1x128xf32, #tpu.memory_space<vmem>>, vector<1x128xf32>
    tpu.vector_store %arg4[%c0_16, %c0_17], %65 {strides = array<i32>} : memref<1x128xf32, #tpu.memory_space<vmem>>, vector<1x128xf32>,
    %c0_18 = arith.constant 0 : index
    %c0_19 = arith.constant 0 : index
    %67 = vector.load %arg5[%c0_18, %c0_19] : memref<1x128xf32, #tpu.memory_space<vmem>>, vector<1x128xf32>
    %68 = arith.extui %61 : vector<1x128xi1> to vector<1x128xi32>
    %69 = arith.sitofp %68 : vector<1x128xi32> to vector<1x128xf32>
    %70 = arith.addf %67, %69 : vector<1x128xf32>
    %c0_20 = arith.constant 0 : index
    %c0_21 = arith.constant 0 : index
    %71 = vector.load %arg5[%c0_20, %c0_21] : memref<1x128xf32, #tpu.memory_space<vmem>>, vector<1x128xf32>
    tpu.vector_store %arg5[%c0_20, %c0_21], %70 {strides = array<i32>} : memref<1x128xf32, #tpu.memory_space<vmem>>, vector<1x128xf32>,
    return
  }
  func.func @transform_0(%arg0: i32, %arg1: i32) -> (i32, i32) {
    %c2_i32 = arith.constant 2 : i32
    %0 = arith.muli %arg0, %c2_i32 : i32
    %1 = arith.addi %0, %arg1 : i32
    %c2_i32_0 = arith.constant 2 : i32
    %2 = arith.minsi %1, %c2_i32_0 : i32
    %c0_i32 = arith.constant 0 : i32
    %c0_i32_1 = arith.constant 0 : i32
    return %2, %c0_i32 : i32, i32
  }
  func.func @transform_1(%arg0: i32, %arg1: i32) -> (i32, i32) {
    %c2_i32 = arith.constant 2 : i32
    %0 = arith.muli %arg0, %c2_i32 : i32
    %1 = arith.addi %0, %arg1 : i32
    %c2_i32_0 = arith.constant 2 : i32
    %2 = arith.minsi %1, %c2_i32_0 : i32
    %c0_i32 = arith.constant 0 : i32
    %c0_i32_1 = arith.constant 0 : i32
    return %c0_i32, %2 : i32, i32
  }
  func.func @transform_2(%arg0: i32, %arg1: i32) -> (i32, i32) {
    %c0_i32 = arith.constant 0 : i32
    %c0_i32_0 = arith.constant 0 : i32
    return %c0_i32, %arg0 : i32, i32
  }
  func.func @transform_3(%arg0: i32, %arg1: i32) -> (i32, i32) {
    %c0_i32 = arith.constant 0 : i32
    %c0_i32_0 = arith.constant 0 : i32
    return %c0_i32, %arg0 : i32, i32
  }
}

</mosaic_0001>

<bundles_post_ra>
// kernel: tpu_custom_call.1
= control target key start
LH: loop header
LB: loop body
LE: loop exit
PB: predicated region body
PF: predicated region fallthrough
CT: control target
= control target key end

     0   :  { %9 = vsyncpa [#allocation3], 0  ;;  %s1248_s0 = inlined_call_operand.vmem [shape: f32[300,8], index: 0, kind: input, shape index: {}]   ;;  %s1249_s1 = inlined_call_operand.vmem [shape: s32[1,300], index: 1, kind: input, shape index: {}]   ;;  %s1250_s2 = inlined_call_operand.hbm [shape: f32[1,256], index: 2, kind: output, shape index: {0}]   ;;  %s1251_s3 = inlined_call_operand.hbm [shape: f32[1,256], index: 3, kind: output, shape index: {1}]  }
   0x1   :  { %11 = vsyncpa [#allocation3 + $0x1], 0 }
   0x2   :  { %12 = vsyncpa [#allocation5], 0 }
   0x3   :  { %14 = vsyncpa [#allocation5 + $0x1], 0  ;;  %s997_s12 = smov 0   ;;  %s999_s13 = smov 0  }
   0x4   :  { %s1001_s14 = smov 0   ;;  %s1003_s15 = smov 0  }
   0x5   :  { %s1005_s16 = smov 0   ;;  %s1007_s17 = smov 0  }
   0x6   :  { %s1009_s18 = smov 0   ;;  %s1011_s19 = smov 0  }
   0x7 LB: > { %s630_s20 = sadd.s32 4294967295, %s969_s19   ;;  %s631_s21 = sadd.s32 4294967294, %s969_s19   ;;  %s969_s19 = sphi %s1011_s19, %s20_s19   ;;  %s965_s18 = sphi %s1009_s18, %s1264_s18   ;;  %s961_s17 = sphi %s1007_s17, %s1263_s17   ;;  %s957_s16 = sphi %s1005_s16, %s1262_s16   ;;  %s953_s15 = sphi %s1003_s15, %s1261_s15   ;;  %s949_s14 = sphi %s1001_s14, %s1260_s14   ;;  %s945_s13 = sphi %s999_s13, %s1259_s13   ;;  %s941_s12 = sphi %s997_s12, %s1258_s12  }
   0x8   : > { %s29_s22 = sadd.s32 1, %s961_s17  ;;  %s32_s23 = sadd.s32 1, %s965_s18 }
   0x9   : > { %p30_p0 = scmp.ge.s32.totalorder %s29_s22, 2  ;;  %p117_p1 = scmp.ne.s32.totalorder %s949_s14, %s945_s13 }
   0xa   : > { %p118_p2 = scmp.eq.s32.totalorder %s630_s20, 3  ;;  %p123_p4 = scmp.ne.s32.totalorder %s945_s13, %s941_s12 }
   0xb   : > { %s1266_s22 = smov (%p30_p0, %s29_s22), 0  ;;  %s1268_s23 = smov (!%p30_p0, %s32_s23), %s965_s18 }
   0xc   : > { %p1046_p3 = por %p118_p2, %p117_p1  ;;  %p34_p5 = scmp.ge.s32.totalorder %s1268_s23, 2 }
   0xd   : > { %p124_p6 = scmp.eq.s32.totalorder %s631_s21, 3  ;;  %p638_p7 = scmp.ge.s32.totalorder %s969_s19, 1 }
   0xe   : > { %p207_p8 = scmp.lt.s32.totalorder %s969_s19, 5  ;;  %s1270_s23 = smov (%p34_p5, %s1268_s23), 0 }
   0xf   : > { %p1056_p9 = por %p124_p6, %p123_p4  ;;  %s104_s26 = ssub.s32 %s965_s18, %s1270_s23 }
  0x10   : > { %p208_p10 = pnand %p638_p7, %p207_p8  ;;  %s107_s27 = sadd.s32 1, %s949_s14 }
  0x11   : > { %p105_p11 = scmp.eq.s32.totalorder %s104_s26, 0  ;;  %s1067_s29 = sand.u32 (!%p208_p10), 1, %s945_s13  }
  0x12   : > { %211 = sbr.rel (%p208_p10) target bundleno = 427 (0x1ab), region = 28  ;;  %s639_s30 = sshll.u32 (!%p208_p10), %s957_s16, 1 }
  0x13   : > { %s1064_s28 = scalar_select %p105_p11, %s949_s14, %s107_s27  }
  0x14   : > { %s1071_s4 = sadd.s32 (!%p208_p10), %s953_s15, %s639_s30  ;;  %s1087_s26 = scalar_lea.vmem (!%p208_p10), [#allocation2], %s1067_s29 }
  0x15   : > { %p251_p12 = scmp.lt.s32.totalorder (!%p208_p10), %s1071_s4, 2  ;;  %s1090_s27 = scalar_lea.vmem (!%p208_p10), [#allocation4], %s1067_s29 }
  0x16   : > { %p646_p0 = scmp.ne.s32.totalorder (!%p208_p10), %s953_s15, 0 }
  0x19   : > { %s252_s5 = scalar_select %p251_p12, %s1071_s4, 2 }
  0x1a   : > { %285 = sbr.rel (%p646_p0) target bundleno = 33 (0x21), region = 32  ;;  %v971_v0 = vmov (!%p646_p0), 0.0  }
  0x1b   : > { %s640_s6 = sshll.u32 %s252_s5, 4  ;;  %s1272_s5 = smov (!%p251_p12, %s252_s5), 2  ;;  %286 = vst [vmem:[%s1087_s26] sm:$0x1] (!%p646_p0), %v971_v0  ;;  %287 = vst [vmem:[%s1090_s27] sm:$0x1] (!%p646_p0), %v971_v0 }
  0x1c   : > { %p258_p13 = scmp.lt.s32.totalorder %s640_s6, 37  ;;  %s277_s9 = scalar_lea.vmem %s1249_s1, %s1272_s5 }
  0x1e   : > { %s1274_s6 = smov (!%p258_p13, %s640_s6), 37 }
  0x1f   : > { %s641_s10 = sshll.u32 %s1274_s6, 3 }
  0x20   : > { %s1084_s21 = scalar_lea.vmem %s1248_s0, %s641_s10 }
  0x21 PF: > { %v288_v1 = vld [vmem:[%s1084_s21] sm:$0xff]  ;;  %v289_v2 = vld [vmem:[%s1084_s21 + $0x8] sm:$0xff]  ;;  %vm312_vm0 = vcmask 64512   ;;  %v972_v3 = vmov 0.0|0.0   ;;  %vm973_vm2 = vmmov 0   ;;  %v974_v6 = vmov 0.0  }
  0x22   : > { %725 = vmatprep.subr.bf16.mxu0 %v972_v3  ;;  %v726_v4 = vpack.c.bf16 %v289_v2, %v288_v1  ;;  %vm1099_vm1 = vmpackc.low %vm312_vm0, %vm312_vm0  ;;  %722 = vmatprep.mubr.msk.f32.mxu0 %vm973_vm2, %v974_v6  ;;  %v290_v7 = vld [vmem:[%s1084_s21 + $0x10] sm:$0xff]  ;;  %v291_v8 = vld [vmem:[%s1084_s21 + $0x18] sm:$0xff]  ;;  %v305_v27 = vlaneseq  ;;  %s667_s15 = sshll.u32 %s1071_s4, 7  ;;  %s669_s4 = sshll.u32 %s957_s16, 4 }
  0x23   : > { %v730_v9 = vpack.c.bf16 %v291_v8, %v290_v7  ;;  %v292_v10 = vld [vmem:[%s1084_s21 + $0x20] sm:$0xff]  ;;  %v293_v11 = vld [vmem:[%s1084_s21 + $0x28] sm:$0xff]  ;;  %v294_v13 = vld [vmem:[%s1084_s21 + $0x30] sm:$0xff]  ;;  %v483_v32 = vstv %s667_s15  ;;  %s1160_s5 = scalar_lea.hbm %s1251_s3, %s669_s4  ;;  %s502_s10 = scalar_lea.sflag [#allocation5], %s1067_s29 }
  0x24   : > { %728 = vmatpush3.bf16.xpose.msk.msra.mxu0 %vm1099_vm1, %v726_v4  ;;  %v734_v12 = vpack.c.bf16 %v293_v11, %v292_v10  ;;  %v295_v14 = vld [vmem:[%s1084_s21 + $0x38] sm:$0xff]  ;;  %v296_v16 = vld [vmem:[%s1084_s21 + $0x40] sm:$0xff]  ;;  %v297_v17 = vld [vmem:[%s1084_s21 + $0x48] sm:$0xff]  ;;  %v1132_v29 = vshrl.u32 %v305_v27, 7  ;;  %v308_v30 = vand.u32 127, %v305_v27  ;;  %s975_s20 = smov [#allocation4]  }
  0x25   : > { %729 = vmatprep.subr.bf16.mxu0 %v972_v3  ;;  %v738_v15 = vpack.c.bf16 %v295_v14, %v294_v13  ;;  %v742_v18 = vpack.c.bf16 %v297_v17, %v296_v16  ;;  %v298_v19 = vld [vmem:[%s1084_s21 + $0x50] sm:$0xff]  ;;  %v299_v20 = vld [vmem:[%s1084_s21 + $0x58] sm:$0xff]  ;;  %v300_v22 = vld [vmem:[%s1084_s21 + $0x60] sm:$0xff] }
  0x26   : > { %v746_v21 = vpack.c.bf16 %v299_v20, %v298_v19  ;;  %v301_v23 = vld [vmem:[%s1084_s21 + $0x68] sm:$0xff]  ;;  %v302_v25 = vld [vmem:[%s1084_s21 + $0x70] sm:$0xff]  ;;  %v303_v26 = vld [vmem:[%s1084_s21 + $0x78] sm:$0xff]  ;;  %vm309_vm3 = vcmp.eq.s32.totalorder %v1132_v29, %v308_v30  ;;  %v484_v33 = vadd.s32 %v483_v32, %v308_v30  ;;  %s847_s21 = sshll.u32 %s975_s20, 4  ;;  %s848_s21 = int_to_ptr.vmem [resolvable:$false] %s847_s21 }
  0x27   : > { %v750_v24 = vpack.c.bf16 %v301_v23, %v300_v22  ;;  %v754_v28 = vpack.c.bf16 %v303_v26, %v302_v25  ;;  %v647_v31 = vsel %vm309_vm3, 1.0, %v974_v6  ;;  %v304_v34 = vld [vmem:[%s277_s9] sm:$0x1]  ;;  %s527_s9 = sshll.u32 %s1090_s27, 4  ;;  %s849_s15 = scalar_lea.vmem %s848_s21, 32  ;;  %s528_s9 = int_to_ptr.vmem [resolvable:$true] %s527_s9 }
  0x28   : > { %vm485_vm4 = vcmp.lt.s32.totalorder %v484_v33, 300  ;;  %vm486_vm5 = vcmp.ne.s32.totalorder %v304_v34, 4294967196  ;;  %v492_v36 = vld [vmem:[%s1090_s27] sm:$0x1]  ;;  %s843_s11 = scalar_lea.vmem %s528_s9, 16  ;;  %p850_p5 = scmp.lt.s32.totalorder %s528_s9, %s848_s21 }
  0x29   : > { %vm1145_vm6 = vmand %vm486_vm5, %vm485_vm4  ;;  %p844_p1 = scmp.ne.s32.totalorder %s528_s9, %s843_s11  ;;  %p851_p6 = scmp.lt.s32.totalorder %s849_s15, %s843_s11 }
  0x2a   : > { %v668_v37 = vsel %vm1145_vm6, 1.0, %v974_v6 }
  0x2b   : > { %v495_v38 = vadd.f32 %v668_v37, %v492_v36  ;;  %p845_p2 = pnand %p844_p1, %p1046_p3  ;;  %p852_p7 = por %p851_p6, %p850_p5 }
  0x2c   : > { %732 = vmatpush3.bf16.xpose.msk.msra.mxu0 %vm1099_vm1, %v730_v9 }
  0x2d   : > { %733 = vmatprep.subr.bf16.mxu0 %v972_v3  ;;  %496 = vst [vmem:[%s1090_s27] sm:$0x1] %v495_v38  ;;  %p846_p4 = pneg %p845_p2 }
  0x2f   : > { %p853_p8 = pnand %p852_p7, %p846_p4 }
  0x34   : > { %736 = vmatpush3.bf16.xpose.msk.msra.mxu0 %vm1099_vm1, %v734_v12 }
  0x35   : > { %737 = vmatprep.subr.bf16.mxu0 %v972_v3 }
  0x3c   : > { %740 = vmatpush3.bf16.xpose.msk.msra.mxu0 %vm1099_vm1, %v738_v15 }
  0x3d   : > { %741 = vmatprep.subr.bf16.mxu0 %v972_v3 }
  0x44   : > { %744 = vmatpush3.bf16.xpose.msk.msra.mxu0 %vm1099_vm1, %v742_v18 }
  0x45   : > { %745 = vmatprep.subr.bf16.mxu0 %v972_v3 }
  0x4c   : > { %748 = vmatpush3.bf16.xpose.msk.msra.mxu0 %vm1099_vm1, %v746_v21 }
  0x4d   : > { %749 = vmatprep.subr.bf16.mxu0 %v972_v3 }
  0x54   : > { %752 = vmatpush3.bf16.xpose.msk.msra.mxu0 %vm1099_vm1, %v750_v24 }
  0x55   : > { %753 = vmatprep.subr.bf16.mxu0 %v972_v3 }
  0x5c   : > { %756 = vmatpush3.bf16.xpose.msk.msra.mxu0 %vm1099_vm1, %v754_v28 }
  0x63   : > { %723 = vmatmul.mubr.msk.f32.vlgmr.msra.gmra.mrb[0].mxu0 %vm312_vm0, %v647_v31 }
  0x64   : > { %856 = shalt.err (!%p853_p8)
}
  0x65   : > { %s857_s27 = scalar_lea.hbm %s1160_s5, 16  ;;  %s861_s7 = scalar_lea.hbm %s1251_s3, 32 }
  0x66   : > { %p858_p10 = scmp.ne.s32.totalorder %s1160_s5, %s857_s27  ;;  %p862_p13 = scmp.lt.u32.totalorder %s1160_s5, %s1251_s3 }
  0x67   : > { %p863_p0 = scmp.lt.u32.totalorder %s861_s7, %s857_s27  ;;  %p865_p2 = scmp.lt.u32.totalorder %s857_s27, %s1160_s5 }
  0x68   : > { %p859_p11 = pnand %p858_p10, %p1046_p3 }
  0x69   : > { %p864_p1 = por %p863_p0, %p862_p13 }
  0x6a   : > { %p860_p12 = pneg %p859_p11 }
  0x6b   : > { %p866_p4 = por %p865_p2, %p864_p1 }
  0x6d   : > { %p867_p5 = pnand %p866_p4, %p860_p12 }
  0x6f   : > { %870 = shalt.err (!%p867_p5)
}
  0x70   : > { %758 = dma.vmem_to_hbm [thread:$0]  (%p1046_p3), %s528_s9, 16, %s1160_s5, %s502_s10   ;;  %v456_v56 = vsub.s32 0, %v1132_v29  ;;  %v488_v19 = vld [vmem:[%s1087_s26] sm:$0x1] }
  0x71   : > { %s514_s5 = sshll.u32 %s1087_s26, 4  ;;  %s1193_s11 = scalar_lea.hbm %s1250_s2, %s669_s4  ;;  %s1195_s5 = int_to_ptr.vmem [resolvable:$true] %s514_s5 }
  0x72   : > { %v457_v58 = vrot.slane %v304_v34, %v456_v56  ;;  %s498_s21 = scalar_lea.sflag [#allocation3], %s1067_s29  ;;  %s871_s15 = scalar_lea.vmem %s1195_s5, 16 }
  0x73   : > { %p872_p6 = scmp.ne.s32.totalorder %s1195_s5, %s871_s15  ;;  %s976_s27 = smov [#allocation2]  }
  0x74   : > { %vm458_vm7 = vcmp.eq.s32.totalorder %v1132_v29, %v457_v58  ;;  %s875_s30 = sshll.u32 %s976_s27, 4  ;;  %s876_s30 = int_to_ptr.vmem [resolvable:$false] %s875_s30 }
  0x75   : > { %v665_v63 = vsel %vm458_vm7, 1.0, %v974_v6  ;;  %p873_p7 = pnand %p872_p6, %p1046_p3  ;;  %s877_s16 = scalar_lea.vmem %s876_s30, 32 }
  0x76   : > { %p878_p10 = scmp.lt.s32.totalorder %s1195_s5, %s876_s30  ;;  %p879_p11 = scmp.lt.s32.totalorder %s877_s16, %s871_s15 }
  0x77   : > { %p874_p8 = pneg %p873_p7 }
  0x78   : > { %p880_p12 = por %p879_p11, %p878_p10 }
  0x7a   : > { %p881_p13 = pnand %p880_p12, %p874_p8 }
 0x136   : > { %v430_v39 = vpop.f32.mrb[0].mxu0 }
 0x137   : > { %v434_v40 = vrot.slane %v430_v39, 4  ;;  %v724_v41 = vpop.f32.mrb[1].mxu0 }
 0x139   : > { %v435_v42 = vmax.f32 %v430_v39, %v434_v40 }
 0x13b   : > { %v436_v43 = vrot.slane %v435_v42, 2 }
 0x13d   : > { %v437_v44 = vmax.f32 %v435_v42, %v436_v43 }
 0x13f   : > { %v438_v45 = vrot.slane %v437_v44, 1 }
 0x141   : > { %v439_v46 = vmax.f32 %v437_v44, %v438_v45 }
 0x143   : > { %v440_v47 = vsub.f32 %v430_v39, %v439_v46 }
 0x145   : > { %v441_v48 = vmul.f32 1.442695, %v440_v47 }
 0x147   : > { %837 = vpow2.f32 %v441_v48 }
 0x151   : > { %v838_v49 = vpop.eup %837 }
 0x152   : > { %v443_v50 = vrot.slane %v838_v49, 4 }
 0x154   : > { %v444_v51 = vadd.f32 %v838_v49, %v443_v50 }
 0x156   : > { %v445_v52 = vrot.slane %v444_v51, 2 }
 0x158   : > { %v446_v53 = vadd.f32 %v445_v52, %v444_v51 }
 0x15a   : > { %v447_v54 = vrot.slane %v446_v53, 1 }
 0x15c   : > { %v448_v55 = vadd.f32 %v447_v54, %v446_v53 }
 0x15e   : > { %839 = vrcp.f32 %v448_v55 }
 0x168   : > { %v840_v57 = vpop.eup %839 }
 0x169   : > { %v450_v59 = vmul.f32 %v840_v57, %v448_v55 }
 0x16b   : > { %v451_v60 = vsub.f32 2.0, %v450_v59 }
 0x16d   : > { %v452_v61 = vmul.f32 %v840_v57, %v451_v60 }
 0x16f   : > { %v453_v62 = vmul.f32 %v838_v49, %v452_v61 }
 0x171   : > { %v461_v0 = vmul.f32 2.0, %v453_v62  ;;  %v464_v1 = vmul.f32 %v453_v62, %v453_v62 }
 0x173   : > { %v462_v2 = vmul.f32 %v665_v63, %v461_v0  ;;  %v465_v3 = vadd.f32 %v665_v63, %v464_v1 }
 0x175   : > { %v466_v4 = vadd.f32 1.0, %v465_v3  ;;  %v463_v9 = vadd.f32 1.0, %v462_v2 }
 0x177   : > { %841 = vrcp.f32 %v466_v4 }
 0x181   : > { %v842_v5 = vpop.eup %841 }
 0x182   : > { %v468_v7 = vmul.f32 %v842_v5, %v466_v4 }
 0x184   : > { %v469_v8 = vsub.f32 2.0, %v468_v7 }
 0x186   : > { %v470_v10 = vmul.f32 %v842_v5, %v469_v8 }
 0x188   : > { %v471_v11 = vmul.f32 %v470_v10, %v463_v9 }
 0x18a   : > { %v472_v12 = vsub.f32 1.0, %v471_v11 }
 0x18c   : > { %v473_v13 = vrot.slane %v472_v12, 4 }
 0x18e   : > { %v474_v6 = vadd.f32 %v473_v13, %v472_v12 }
 0x190   : > { %v475_v14 = vrot.slane %v474_v6, 2 }
 0x192   : > { %v476_v15 = vadd.f32 %v475_v14, %v474_v6 }
 0x194   : > { %v477_v16 = vrot.slane %v476_v15, 1 }
 0x196   : > { %v478_v17 = vadd.f32 %v477_v16, %v476_v15 }
 0x198   : > { %v479_v18 = vsub.f32 %v478_v17, %v472_v12 }
 0x19a   : > { %v489_v20 = vsel %vm1145_vm6, %v479_v18, 0.0 }
 0x19b   : > { %v490_v21 = vadd.f32 %v489_v20, %v488_v19 }
 0x19d   : > { %491 = vst [vmem:[%s1087_s26] sm:$0x1] %v490_v21 }
 0x19e   : > { %884 = shalt.err (!%p881_p13)
}
 0x19f   : > { %s885_s29 = scalar_lea.hbm %s1193_s11, 16  ;;  %s889_s6 = scalar_lea.hbm %s1250_s2, 32 }
 0x1a0   : > { %p886_p0 = scmp.ne.s32.totalorder %s1193_s11, %s885_s29  ;;  %p890_p4 = scmp.lt.u32.totalorder %s1193_s11, %s1250_s2 }
 0x1a1   : > { %p891_p5 = scmp.lt.u32.totalorder %s889_s6, %s885_s29  ;;  %p893_p7 = scmp.lt.u32.totalorder %s885_s29, %s1193_s11 }
 0x1a2   : > { %p887_p1 = pnand %p886_p0, %p1046_p3 }
 0x1a3   : > { %p892_p6 = por %p891_p5, %p890_p4 }
 0x1a4   : > { %p888_p2 = pneg %p887_p1 }
 0x1a5   : > { %p894_p8 = por %p893_p7, %p892_p6 }
 0x1a7   : > { %p895_p10 = pnand %p894_p8, %p888_p2 }
 0x1a9   : > { %898 = shalt.err (!%p895_p10)
}
 0x1aa   : > { %757 = dma.vmem_to_hbm [thread:$0]  (%p1046_p3), %s1195_s5, 16, %s1193_s11, %s498_s21  }
 0x1ab PF: > { %p768_p11 = scmp.ge.s32.totalorder %s969_s19, 2  ;;  %s539_s20 = sand.u32 1, %s941_s12  }
 0x1ac   : > { %s540_s9 = scalar_lea.sflag [#allocation3], %s539_s20 }
 0x1ad   : > { %p762_p12 = pnand %p768_p11, %p1056_p9 }
 0x1af   : > { %932 = dma.done.wait (!%p762_p12), %s540_s9, 16  }
 0x1b0   : > { %934 = vsyncadd (!%p762_p12), %s540_s9, 4294967280  ;;  %s548_s10 = scalar_lea.sflag [#allocation5], %s539_s20 }
 0x1b1   : > { %936 = dma.done.wait (!%p762_p12), %s548_s10, 16  }
 0x1b2   : > { %938 = vsyncadd (!%p762_p12), %s548_s10, 4294967280  ;;  %s20_s19 = sadd.s32 1, %s969_s19   ;;  %s1258_s12 = smov %s945_s13 }
 0x1b3   : > { %p17_p13 = scmp.ge.s32.totalorder %s20_s19, 6   ;;  %s1259_s13 = smov %s949_s14 }
 0x1b4   : > { %s1260_s14 = smov %s1064_s28  ;;  %s1261_s15 = smov %s961_s17 }
 0x1b5   : > { %s1262_s16 = smov %s965_s18  ;;  %s1263_s17 = smov %s1266_s22 }
 0x1b6   : > { %s1264_s18 = smov %s1270_s23  ;;  %19 = sbr.rel (!%p17_p13) target bundleno = 7 (0x7), region = 87 }
 0x1bd   :  { %552 = vsyncpa [#allocation3], 1 }
 0x1be   :  { %554 = vsyncpa [#allocation3 + $0x1], 1 }
 0x1bf   :  { %555 = vsyncpa [#allocation5], 1 }
 0x1c0   :  { %557 = vsyncpa [#allocation5 + $0x1], 1 }

</bundles_post_ra>
